<compile_context>
chip_gen: v7x
topology: tpu7x:2x2x1
jax: 0.10.0
libtpu: 0.0.40
codegen_flags: <defaults>
</compile_context>

<pallas_src>
import functools

import jax
import jax.numpy as jnp
from jax.experimental import pallas as pl
from jax.experimental.pallas import tpu as pltpu


def _round_up(x, m):
    return (x + m - 1) // m * m


def _cdiv(a, b):
    return -(-a // b)


def _choose_tile_n(n_pixels, num_class):
    """Lane-dense pixel tile: ~2 MiB of f32 pred per pipeline buffer (total live
    set ~12-16 MiB incl. f32 temporaries -> fits every generation's scoped VMEM),
    multiple of 128, capped at 32768 lanes."""
    per_buffer_bytes = 2 * 1024 * 1024
    tn = per_buffer_bytes // (max(num_class, 1) * 4)
    tn = max(128, min(32768, (tn // 128) * 128))
    return min(tn, _round_up(n_pixels, 128))


def _jce_partial_kernel(pred_ref, tgt_ref, s_ref, cnt_ref, lse_ref, lse_acc,
                        *, n_pixels):
    """Per (batch, pixel-split) grid group accumulate:
         S[i,k]   = sum_n pred[i,n] * onehot[k,n]          (C, C)
         cnt[0,k] = sum_n onehot[k,n]                      (1, C)
         lse      = sum_{valid n} logsumexp_c pred[c,n]    (1, 1)
       The tiny O(C^2) J-loss / CE finalize happens in the wrapper."""
    t = pl.program_id(2)
    t_last = pl.num_programs(2) - 1

    @pl.when(t == 0)
    def _init():
        s_ref[...] = jnp.zeros_like(s_ref)
        cnt_ref[...] = jnp.zeros_like(cnt_ref)
        lse_acc[...] = jnp.zeros_like(lse_acc)

    pred = pred_ref[...].astype(jnp.float32)          # (C, TN)
    tgt = tgt_ref[...]                                # (1, TN) int32
    C, TN = pred.shape

    # Lane validity from the *global* pixel index: pred/target are not padded in
    # HBM, so the partial last block and fully-overrun split tiles carry
    # unspecified data that must be masked out.
    tile_idx = pl.program_id(1) * pl.num_programs(2) + pl.program_id(2)
    lane = jax.lax.broadcasted_iota(jnp.int32, (1, TN), 1)
    valid = (tile_idx * TN + lane) < n_pixels                     # (1, TN)

    # Zero garbage lanes so NaN/Inf bit patterns can't poison S (NaN * 0 = NaN).
    pred = jnp.where(valid, pred, 0.0)

    class_ids = jax.lax.broadcasted_iota(jnp.int32, (C, TN), 0)
    onehot = jnp.logical_and(class_ids == tgt, valid).astype(jnp.float32)

    # S[i,k] += sum_n pred[i,n] * onehot[k,n]   (MXU)
    s_ref[...] += jax.lax.dot_general(
        pred, onehot, (((1,), (1,)), ((), ())),
        preferred_element_type=jnp.float32)
    # Per-class pixel counts, also on the MXU (avoids a per-tile XLU reduce).
    ones_row = jnp.ones((1, TN), jnp.float32)
    cnt_ref[...] += jax.lax.dot_general(
        ones_row, onehot, (((1,), (1,)), ((), ())),
        preferred_element_type=jnp.float32)

    # logsumexp over classes; accumulate lane-wise (VPU add) and do the single
    # cross-lane reduction only once per group, at the last tile.
    m = jnp.max(pred, axis=0, keepdims=True)                      # (1, TN)
    lse = m + jnp.log(jnp.sum(jnp.exp(pred - m), axis=0, keepdims=True))
    lse_acc[...] += jnp.where(valid, lse, 0.0)

    @pl.when(t == t_last)
    def _finalize():
        lse_ref[...] = jnp.reshape(jnp.sum(lse_acc[...]), (1, 1))


def j_regularized_cross_entropy_mean(pred, target, j_wgt=None,
                                     num_pixel_splits=None, tile_n=None):
    """Pallas implementation of JRegularizedCrossEntropyLoss()(pred, target)
    with ce_wgt=None, reduction='mean' (module defaults)."""
    B, C, H, W = pred.shape
    N = H * W

    TN = _choose_tile_n(N, C) if tile_n is None else int(tile_n)
    num_tiles = _cdiv(N, TN)

    # Pixel-split parallel axis: keeps both v7x TensorCores busy when the batch
    # axis alone cannot (B == 1).  Harmless on single-TC chips.  Callers may
    # override (e.g. num_pixel_splits=2 for odd B on v7x).
    if num_pixel_splits is None:
        num_pixel_splits = 2 if B == 1 else 1
    P = max(1, min(int(num_pixel_splits), num_tiles))
    tps = _cdiv(num_tiles, P)              # tiles per split (last split may overrun)

    # No wrapper-side materialization of pred: no astype, no padding.  The
    # reshapes are layout-preserving collapses of trailing dims (bitcasts).
    pred_r = pred.reshape(B, C, N)
    tgt_r = target.reshape(B, 1, N).astype(jnp.int32)

    if N < TN:
        # Tiny image: a single partial tile whose block would exceed the array
        # extent; pad (the whole array is < ~2 MiB by the TN budget, so cheap).
        pad = TN - N
        pred_r = jnp.pad(pred_r, ((0, 0), (0, 0), (0, pad)))
        tgt_r = jnp.pad(tgt_r, ((0, 0), (0, 0), (0, pad)), constant_values=-1)

    last_tile = num_tiles - 1
    if P == 1:
        def pix_map(b, p, t):
            return (b, 0, t)
    else:
        def pix_map(b, p, t):
            # Overrun tiles of the last split are clamped to a valid block; the
            # in-kernel pixel-index mask zeroes their contribution.
            return (b, 0, jnp.minimum(p * tps + t, last_tile))

    s_parts, cnt_parts, lse_parts = pl.pallas_call(
        functools.partial(_jce_partial_kernel, n_pixels=N),
        out_shape=(
            jax.ShapeDtypeStruct((B, P, C, C), jnp.float32),
            jax.ShapeDtypeStruct((B, P, 1, C), jnp.float32),
            jax.ShapeDtypeStruct((B, P, 1, 1), jnp.float32),
        ),
        grid_spec=pltpu.PrefetchScalarGridSpec(
            num_scalar_prefetch=0,
            grid=(B, P, tps),
            in_specs=[
                pl.BlockSpec((None, C, TN), pix_map),     # pred tile (C, TN)
                pl.BlockSpec((None, 1, TN), pix_map),     # target tile (1, TN)
            ],
            out_specs=[
                pl.BlockSpec((None, None, C, C), lambda b, p, t: (b, p, 0, 0)),
                pl.BlockSpec((None, None, 1, C), lambda b, p, t: (b, p, 0, 0)),
                pl.BlockSpec((None, None, 1, 1), lambda b, p, t: (b, p, 0, 0)),
            ],
            scratch_shapes=[
                pltpu.VMEM((1, TN), jnp.float32),   # lane-wise logsumexp accumulator
            ],
        ),
        compiler_params=pltpu.CompilerParams(
            dimension_semantics=("parallel", "parallel", "arbitrary"),
            # Explicit so v7x (64 MiB physical) keeps full double-buffering; the
            # TN budget guarantees we fit with headroom on every generation.
            vmem_limit_bytes=32 * 1024 * 1024,
        ),
    )(pred_r, tgt_r)

    # Tiny O(B*C^2) finalize in plain JAX.
    S = jnp.sum(s_parts, axis=1)                      # (B, C, C)
    cnt = jnp.sum(cnt_parts, axis=1)[:, 0, :]         # (B, C) per-class pixel counts
    lse_sum = jnp.sum(lse_parts, axis=(1, 2, 3))      # (B,)

    A = S / cnt[:, None, :]        # 0/0 -> NaN for absent classes (matches torch)
    diag = jnp.diagonal(A, axis1=1, axis2=2)          # (B, C) = A[b, i, i]
    logt = jnp.log(0.5 + (diag[:, :, None] - A) * 0.5)
    if j_wgt is not None:
        logt = jnp.asarray(j_wgt, jnp.float32)[None] * logt
    eye = jnp.eye(C, dtype=bool)[None]
    j_b = -jnp.sum(jnp.where(eye, 0.0, logt), axis=(1, 2))        # (B,)
    jl = jnp.mean(j_b)                                            # reduction='mean'

    # cross-entropy: sum_n pred[target[n], n] == trace(S)
    ce_sum = lse_sum - jnp.trace(S, axis1=1, axis2=2)             # (B,)
    ce = jnp.sum(ce_sum) / (B * N)                                # mean over all pixels
    return jl + ce


def _reference(pred, target, j_wgt=None):
    """Pure-JAX reference mirroring the PyTorch code (reduction='mean')."""
    B, C, H, W = pred.shape
    onehot = jax.nn.one_hot(target, C, axis=1, dtype=pred.dtype)      # (B,C,H,W)
    n_i = onehot.sum(axis=(-2, -1))[..., None, None]
    phi = onehot / n_i
    A = jnp.einsum('bihw,bkhw->bik', pred, phi)
    diag = jnp.diagonal(A, axis1=1, axis2=2)[:, :, None]
    eye = jnp.eye(C, dtype=bool)[None]
    w = jnp.ones((C, C), pred.dtype) if j_wgt is None else jnp.asarray(j_wgt, pred.dtype)
    loss = jnp.where(eye, 0.0, w[None] * jnp.log(0.5 + (diag - A) / 2))
    jl = (-loss.sum(axis=(1, 2))).mean()
    logits = pred.reshape(B, C, H * W)
    tgt = target.reshape(B, H * W)
    logp = jax.nn.log_softmax(logits, axis=1)
    ce = -jnp.take_along_axis(logp, tgt[:, None, :], axis=1).mean()
    return jl + ce


if __name__ == "__main__":
    key = jax.random.PRNGKey(0)
    jrce = jax.jit(j_regularized_cross_entropy_mean,
                   static_argnames=("num_pixel_splits", "tile_n"))

    # Test 1: 128-aligned pixel count (N = 256), B = 2.
    B, C, H, W = 2, 4, 16, 16
    kp, kt = jax.random.split(key)
    pred = jax.random.normal(kp, (B, C, H, W), dtype=jnp.float32)
    target = jax.random.randint(kt, (B, H, W), 0, C, dtype=jnp.int32)
    # ensure every class is present in every image (the torch code divides by
    # per-class counts and would produce nan otherwise)
    target = target.at[:, 0, :C].set(jnp.arange(C, dtype=jnp.int32))
    result = jax.block_until_ready(jrce(pred, target))
    ref = jax.block_until_ready(_reference(pred, target))
    assert jnp.allclose(result, ref, rtol=1e-4, atol=1e-4), (result, ref)

    # Test 2: non-aligned pixel count (N = 100) exercises the tail-mask path.
    B2, C2, H2, W2 = 2, 4, 10, 10
    kp2, kt2 = jax.random.split(jax.random.fold_in(key, 1))
    pred2 = 0.5 * jax.random.normal(kp2, (B2, C2, H2, W2), dtype=jnp.float32)
    target2 = jax.random.randint(kt2, (B2, H2, W2), 0, C2, dtype=jnp.int32)
    target2 = target2.at[:, 0, :C2].set(jnp.arange(C2, dtype=jnp.int32))
    result2 = jax.block_until_ready(jrce(pred2, target2))
    ref2 = jax.block_until_ready(_reference(pred2, target2))
    assert jnp.allclose(result2, ref2, rtol=1e-4, atol=1e-4), (result2, ref2)

    # Test 3: B = 1 with a forced small tile -> multi-tile accumulation, the
    # 2-way pixel split (v7x megacore path), an overrun (clamped) tile, and
    # explicit j_wgt.
    B3, C3, H3, W3 = 1, 4, 20, 19          # N = 380 -> 3 tiles of 128, split in 2
    kp3, kt3 = jax.random.split(jax.random.fold_in(key, 2))
    pred3 = 0.5 * jax.random.normal(kp3, (B3, C3, H3, W3), dtype=jnp.float32)
    target3 = jax.random.randint(kt3, (B3, H3, W3), 0, C3, dtype=jnp.int32)
    target3 = target3.at[:, 0, :C3].set(jnp.arange(C3, dtype=jnp.int32))
    j_wgt3 = 0.5 + jnp.arange(C3 * C3, dtype=jnp.float32).reshape(C3, C3) / (C3 * C3)
    result3 = jax.block_until_ready(
        jrce(pred3, target3, j_wgt3, num_pixel_splits=2, tile_n=128))
    ref3 = jax.block_until_ready(_reference(pred3, target3, j_wgt3))
    assert jnp.allclose(result3, ref3, rtol=1e-4, atol=1e-4), (result3, ref3)

    print("KERNEL_OK")
</pallas_src>

<mosaic_0001>
module attributes {stable_mosaic.version = 11 : i64} {
  func.func @_jce_partial_kernel(%arg0: i32, %arg1: i32, %arg2: i32, %arg3: memref<1x4x256xf32, #tpu.memory_space<vmem>>, %arg4: memref<1x1x256xi32, #tpu.memory_space<vmem>>, %arg5: memref<1x1x4x4xf32, #tpu.memory_space<vmem>>, %arg6: memref<1x1x1x4xf32, #tpu.memory_space<vmem>>, %arg7: memref<1x1x1x1xf32, #tpu.memory_space<vmem>>, %arg8: memref<1x256xf32, #tpu.memory_space<vmem>>) attributes {dimension_semantics = [#tpu.dimension_semantics<parallel>, #tpu.dimension_semantics<parallel>, #tpu.dimension_semantics<arbitrary>], iteration_bounds = array<i64: 2, 1, 1>, scalar_prefetch = 0 : i64, scratch_operands = 1 : i64, tpu.core_type = #tpu.core_type<tc>, window_params = [{transform_indices = @transform_0, window_bounds = array<i64: 1, 4, 256>}, {transform_indices = @transform_1, window_bounds = array<i64: 1, 1, 256>}, {transform_indices = @transform_2, window_bounds = array<i64: 1, 1, 4, 4>}, {transform_indices = @transform_3, window_bounds = array<i64: 1, 1, 1, 4>}, {transform_indices = @transform_4, window_bounds = array<i64: 1, 1, 1, 1>}]} {
    %c0_i32 = arith.constant 0 : i32
    %0 = arith.cmpi eq, %arg2, %c0_i32 : i32
    %1 = arith.extui %0 : i1 to i32
    %c0_i32_0 = arith.constant 0 : i32
    %2 = arith.cmpi ne, %1, %c0_i32_0 : i32
    scf.if %2 {
      %cst_35 = arith.constant 0.000000e+00 : f32
      %58 = vector.broadcast %cst_35 : f32 to vector<4x4xf32>
      %c0_36 = arith.constant 0 : index
      %c0_37 = arith.constant 0 : index
      %c0_38 = arith.constant 0 : index
      %c0_39 = arith.constant 0 : index
      %59 = vector.load %arg5[%c0_36, %c0_37, %c0_38, %c0_39] : memref<1x1x4x4xf32, #tpu.memory_space<vmem>>, vector<1x1x4x4xf32>
      %60 = vector.shape_cast %59 : vector<1x1x4x4xf32> to vector<4x4xf32>
      %61 = vector.shape_cast %58 : vector<4x4xf32> to vector<1x1x4x4xf32>
      tpu.vector_store %arg5[%c0_36, %c0_37, %c0_38, %c0_39], %61 {strides = array<i32>} : memref<1x1x4x4xf32, #tpu.memory_space<vmem>>, vector<1x1x4x4xf32>,
      %cst_40 = arith.constant 0.000000e+00 : f32
      %62 = vector.broadcast %cst_40 : f32 to vector<1x4xf32>
      %c0_41 = arith.constant 0 : index
      %c0_42 = arith.constant 0 : index
      %c0_43 = arith.constant 0 : index
      %c0_44 = arith.constant 0 : index
      %63 = vector.load %arg6[%c0_41, %c0_42, %c0_43, %c0_44] : memref<1x1x1x4xf32, #tpu.memory_space<vmem>>, vector<1x1x1x4xf32>
      %64 = vector.shape_cast %63 : vector<1x1x1x4xf32> to vector<1x4xf32>
      %65 = vector.shape_cast %62 : vector<1x4xf32> to vector<1x1x1x4xf32>
      tpu.vector_store %arg6[%c0_41, %c0_42, %c0_43, %c0_44], %65 {strides = array<i32>} : memref<1x1x1x4xf32, #tpu.memory_space<vmem>>, vector<1x1x1x4xf32>,
      %cst_45 = arith.constant 0.000000e+00 : f32
      %66 = vector.broadcast %cst_45 : f32 to vector<1x256xf32>
      %c0_46 = arith.constant 0 : index
      %c0_47 = arith.constant 0 : index
      %67 = vector.load %arg8[%c0_46, %c0_47] : memref<1x256xf32, #tpu.memory_space<vmem>>, vector<1x256xf32>
      tpu.vector_store %arg8[%c0_46, %c0_47], %66 {strides = array<i32>} : memref<1x256xf32, #tpu.memory_space<vmem>>, vector<1x256xf32>,
    } else {
    }
    %c0 = arith.constant 0 : index
    %c0_1 = arith.constant 0 : index
    %c0_2 = arith.constant 0 : index
    %3 = vector.load %arg3[%c0, %c0_1, %c0_2] : memref<1x4x256xf32, #tpu.memory_space<vmem>>, vector<1x4x256xf32>
    %4 = vector.shape_cast %3 : vector<1x4x256xf32> to vector<4x256xf32>
    %c0_3 = arith.constant 0 : index
    %c0_4 = arith.constant 0 : index
    %c0_5 = arith.constant 0 : index
    %5 = vector.load %arg4[%c0_3, %c0_4, %c0_5] : memref<1x1x256xi32, #tpu.memory_space<vmem>>, vector<1x1x256xi32>
    %6 = vector.shape_cast %5 : vector<1x1x256xi32> to vector<1x256xi32>
    %c1_i32 = arith.constant 1 : i32
    %7 = arith.muli %arg1, %c1_i32 : i32
    %8 = arith.addi %7, %arg2 : i32
    %9 = tpu.iota {dimensions = array<i32: 1>} : vector<1x256xi32>
    %c256_i32 = arith.constant 256 : i32
    %10 = arith.muli %8, %c256_i32 : i32
    %11 = vector.broadcast %10 : i32 to vector<1x256xi32>
    %12 = arith.addi %11, %9 : vector<1x256xi32>
    %c256_i32_6 = arith.constant 256 : i32
    %13 = vector.broadcast %c256_i32_6 : i32 to vector<1x256xi32>
    %14 = arith.cmpi slt, %12, %13 : vector<1x256xi32>
    %cst = arith.constant 0.000000e+00 : f32
    %15 = vector.shape_cast %14 : vector<1x256xi1> to vector<1x256xi1>
    %16 = vector.broadcast %15 : vector<1x256xi1> to vector<4x256xi1>
    %17 = vector.broadcast %cst : f32 to vector<4x256xf32>
    %18 = arith.select %16, %4, %17 : vector<4x256xi1>, vector<4x256xf32>
    %19 = tpu.iota {dimensions = array<i32: 0>} : vector<4x256xi32>
    %20 = vector.broadcast %6 : vector<1x256xi32> to vector<4x256xi32>
    %21 = arith.cmpi eq, %19, %20 : vector<4x256xi32>
    %22 = vector.broadcast %14 : vector<1x256xi1> to vector<4x256xi1>
    %23 = arith.andi %21, %22 : vector<4x256xi1>
    %24 = arith.extui %23 : vector<4x256xi1> to vector<4x256xi32>
    %25 = arith.sitofp %24 : vector<4x256xi32> to vector<4x256xf32>
    %c0_7 = arith.constant 0 : index
    %c0_8 = arith.constant 0 : index
    %c0_9 = arith.constant 0 : index
    %c0_10 = arith.constant 0 : index
    %26 = vector.load %arg5[%c0_7, %c0_8, %c0_9, %c0_10] : memref<1x1x4x4xf32, #tpu.memory_space<vmem>>, vector<1x1x4x4xf32>
    %27 = vector.shape_cast %26 : vector<1x1x4x4xf32> to vector<4x4xf32>
    %cst_11 = arith.constant dense<0.000000e+00> : vector<4x4xf32>
    %28 = tpu.matmul %18, %25, %cst_11 {dimension_numbers = #tpu.dot_dimension_numbers<[1], [1], [0], [0], [0, 0, 1, 0], [], []>} : vector<4x256xf32>, vector<4x256xf32>, vector<4x4xf32> -> vector<4x4xf32>
    %29 = arith.addf %27, %28 : vector<4x4xf32>
    %c0_12 = arith.constant 0 : index
    %c0_13 = arith.constant 0 : index
    %c0_14 = arith.constant 0 : index
    %c0_15 = arith.constant 0 : index
    %30 = vector.load %arg5[%c0_12, %c0_13, %c0_14, %c0_15] : memref<1x1x4x4xf32, #tpu.memory_space<vmem>>, vector<1x1x4x4xf32>
    %31 = vector.shape_cast %30 : vector<1x1x4x4xf32> to vector<4x4xf32>
    %32 = vector.shape_cast %29 : vector<4x4xf32> to vector<1x1x4x4xf32>
    tpu.vector_store %arg5[%c0_12, %c0_13, %c0_14, %c0_15], %32 {strides = array<i32>} : memref<1x1x4x4xf32, #tpu.memory_space<vmem>>, vector<1x1x4x4xf32>,
    %cst_16 = arith.constant 1.000000e+00 : f32
    %33 = vector.broadcast %cst_16 : f32 to vector<1x256xf32>
    %c0_17 = arith.constant 0 : index
    %c0_18 = arith.constant 0 : index
    %c0_19 = arith.constant 0 : index
    %c0_20 = arith.constant 0 : index
    %34 = vector.load %arg6[%c0_17, %c0_18, %c0_19, %c0_20] : memref<1x1x1x4xf32, #tpu.memory_space<vmem>>, vector<1x1x1x4xf32>
    %35 = vector.shape_cast %34 : vector<1x1x1x4xf32> to vector<1x4xf32>
    %cst_21 = arith.constant dense<0.000000e+00> : vector<1x4xf32>
    %36 = tpu.matmul %33, %25, %cst_21 {dimension_numbers = #tpu.dot_dimension_numbers<[1], [1], [0], [0], [0, 0, 1, 0], [], []>} : vector<1x256xf32>, vector<4x256xf32>, vector<1x4xf32> -> vector<1x4xf32>
    %37 = arith.addf %35, %36 : vector<1x4xf32>
    %c0_22 = arith.constant 0 : index
    %c0_23 = arith.constant 0 : index
    %c0_24 = arith.constant 0 : index
    %c0_25 = arith.constant 0 : index
    %38 = vector.load %arg6[%c0_22, %c0_23, %c0_24, %c0_25] : memref<1x1x1x4xf32, #tpu.memory_space<vmem>>, vector<1x1x1x4xf32>
    %39 = vector.shape_cast %38 : vector<1x1x1x4xf32> to vector<1x4xf32>
    %40 = vector.shape_cast %37 : vector<1x4xf32> to vector<1x1x1x4xf32>
    tpu.vector_store %arg6[%c0_22, %c0_23, %c0_24, %c0_25], %40 {strides = array<i32>} : memref<1x1x1x4xf32, #tpu.memory_space<vmem>>, vector<1x1x1x4xf32>,
    %cst_26 = arith.constant dense<0xFF800000> : vector<256xf32>
    %41 = vector.multi_reduction <maximumf>, %18, %cst_26 [0] : vector<4x256xf32> to vector<256xf32>
    %42 = vector.shape_cast %41 : vector<256xf32> to vector<1x256xf32>
    %43 = vector.broadcast %42 : vector<1x256xf32> to vector<4x256xf32>
    %44 = arith.subf %18, %43 : vector<4x256xf32>
    %45 = math.exp %44 : vector<4x256xf32>
    %cst_27 = arith.constant dense<0.000000e+00> : vector<256xf32>
    %46 = vector.multi_reduction <add>, %45, %cst_27 [0] : vector<4x256xf32> to vector<256xf32>
    %47 = vector.shape_cast %46 : vector<256xf32> to vector<1x256xf32>
    %48 = math.log %47 : vector<1x256xf32>
    %49 = arith.addf %42, %48 : vector<1x256xf32>
    %c0_28 = arith.constant 0 : index
    %c0_29 = arith.constant 0 : index
    %50 = vector.load %arg8[%c0_28, %c0_29] : memref<1x256xf32, #tpu.memory_space<vmem>>, vector<1x256xf32>
    %cst_30 = arith.constant 0.000000e+00 : f32
    %51 = vector.broadcast %cst_30 : f32 to vector<1x256xf32>
    %52 = arith.select %14, %49, %51 : vector<1x256xi1>, vector<1x256xf32>
    %53 = arith.addf %50, %52 : vector<1x256xf32>
    %c0_31 = arith.constant 0 : index
    %c0_32 = arith.constant 0 : index
    %54 = vector.load %arg8[%c0_31, %c0_32] : memref<1x256xf32, #tpu.memory_space<vmem>>, vector<1x256xf32>
    tpu.vector_store %arg8[%c0_31, %c0_32], %53 {strides = array<i32>} : memref<1x256xf32, #tpu.memory_space<vmem>>, vector<1x256xf32>,
    %c0_i32_33 = arith.constant 0 : i32
    %55 = arith.cmpi eq, %arg2, %c0_i32_33 : i32
    %56 = arith.extui %55 : i1 to i32
    %c0_i32_34 = arith.constant 0 : i32
    %57 = arith.cmpi ne, %56, %c0_i32_34 : i32
    scf.if %57 {
      %c0_35 = arith.constant 0 : index
      %c0_36 = arith.constant 0 : index
      %58 = vector.load %arg8[%c0_35, %c0_36] : memref<1x256xf32, #tpu.memory_space<vmem>>, vector<1x256xf32>
      %59 = vector.shape_cast %58 : vector<1x256xf32> to vector<1x1x256xf32>
      %cst_37 = arith.constant dense<0.000000e+00> : vector<1xf32>
      %60 = vector.multi_reduction <add>, %59, %cst_37 [1, 2] : vector<1x1x256xf32> to vector<1xf32>
      %61 = vector.shape_cast %60 : vector<1xf32> to vector<1x1x1xf32>
      %62 = vector.extract %61[0, 0, 0] : f32 from vector<1x1x1xf32>
      %63 = vector.broadcast %62 : f32 to vector<1x1xf32>
      %c0_38 = arith.constant 0 : index
      %c0_39 = arith.constant 0 : index
      %c0_40 = arith.constant 0 : index
      %c0_41 = arith.constant 0 : index
      %64 = vector.load %arg7[%c0_38, %c0_39, %c0_40, %c0_41] : memref<1x1x1x1xf32, #tpu.memory_space<vmem>>, vector<1x1x1x1xf32>
      %65 = vector.shape_cast %64 : vector<1x1x1x1xf32> to vector<1x1xf32>
      %66 = vector.shape_cast %63 : vector<1x1xf32> to vector<1x1x1x1xf32>
      tpu.vector_store %arg7[%c0_38, %c0_39, %c0_40, %c0_41], %66 {strides = array<i32>} : memref<1x1x1x1xf32, #tpu.memory_space<vmem>>, vector<1x1x1x1xf32>,
    } else {
    }
    return
  }
  func.func @transform_0(%arg0: i32, %arg1: i32, %arg2: i32) -> (i32, i32, i32) {
    %c0_i32 = arith.constant 0 : i32
    %c0_i32_0 = arith.constant 0 : i32
    return %arg0, %c0_i32, %arg2 : i32, i32, i32
  }
  func.func @transform_1(%arg0: i32, %arg1: i32, %arg2: i32) -> (i32, i32, i32) {
    %c0_i32 = arith.constant 0 : i32
    %c0_i32_0 = arith.constant 0 : i32
    return %arg0, %c0_i32, %arg2 : i32, i32, i32
  }
  func.func @transform_2(%arg0: i32, %arg1: i32, %arg2: i32) -> (i32, i32, i32, i32) {
    %c0_i32 = arith.constant 0 : i32
    %c0_i32_0 = arith.constant 0 : i32
    %c0_i32_1 = arith.constant 0 : i32
    return %arg0, %arg1, %c0_i32, %c0_i32_0 : i32, i32, i32, i32
  }
  func.func @transform_3(%arg0: i32, %arg1: i32, %arg2: i32) -> (i32, i32, i32, i32) {
    %c0_i32 = arith.constant 0 : i32
    %c0_i32_0 = arith.constant 0 : i32
    %c0_i32_1 = arith.constant 0 : i32
    return %arg0, %arg1, %c0_i32, %c0_i32_0 : i32, i32, i32, i32
  }
  func.func @transform_4(%arg0: i32, %arg1: i32, %arg2: i32) -> (i32, i32, i32, i32) {
    %c0_i32 = arith.constant 0 : i32
    %c0_i32_0 = arith.constant 0 : i32
    %c0_i32_1 = arith.constant 0 : i32
    return %arg0, %arg1, %c0_i32, %c0_i32_0 : i32, i32, i32, i32
  }
}

</mosaic_0001>

<bundles_post_ra>
// kernel: j_regularized_cross_entropy_mean.1
= control target key start
LH: loop header
LB: loop body
LE: loop exit
PB: predicated region body
PF: predicated region fallthrough
CT: control target
= control target key end

     0   :  { %s877_s15 = smov 0   ;;  %s879_s16 = smov 0   ;;  %s958_s0 = inlined_call_operand.vmem [shape: f32[2,4,256], index: 0, kind: input, shape index: {}]   ;;  %s959_s1 = inlined_call_operand.vmem [shape: s32[2,1,256], index: 1, kind: input, shape index: {}]   ;;  %s960_s2 = inlined_call_operand.vmem [shape: f32[2,1,4,4], index: 2, kind: output, shape index: {0}]   ;;  %s961_s3 = inlined_call_operand.vmem [shape: f32[2,1,1,4], index: 3, kind: output, shape index: {1}]   ;;  %s962_s4 = inlined_call_operand.vmem [shape: f32[2,1,1,1], index: 4, kind: output, shape index: {2}]  }
   0x1   :  { %s881_s17 = smov 0  }
   0x2 LB: > { %s34_s18 = sadd.s32 1, %s843_s16  ;;  %p773_p0 = scmp.ge.s32.totalorder %s847_s17, 1  ;;  %s847_s17 = sphi %s881_s17, %s15_s17   ;;  %s843_s16 = sphi %s879_s16, %s966_s16   ;;  %s839_s15 = sphi %s877_s15, %s965_s15  }
   0x3   : > { %p36_p1 = scmp.ge.s32.totalorder %s34_s18, 2  ;;  %p215_p2 = scmp.lt.s32.totalorder %s847_s17, 3 }
   0x5   : > { %s968_s18 = smov (%p36_p1, %s34_s18), 0  ;;  %p216_p3 = pnand %p773_p0, %p215_p2 }
   0x6   : > { %p268_p4 = scmp.lt.s32.totalorder (!%p216_p3), %s839_s15, 1  ;;  %v313_v0 = vlaneseq (!%p216_p3)  ;;  %v849_v1 = vmov (!%p216_p3), 1.0   ;;  %v850_v4 = vmov (!%p216_p3), 0.0   ;;  %vm505_vm1 = vcmask (!%p216_p3), 1043456  }
   0x7   : > { %219 = sbr.rel (%p216_p3) target bundleno = 304 (0x130), region = 28  ;;  %496 = vmatprep.mubr.f32.mxu1 (!%p216_p3), %v849_v1  ;;  %v851_v46 = vmov (!%p216_p3), 1966171168   ;;  %vm588_vm4 = vcmask (!%p216_p3), 1040384   ;;  %vm309_vm5 = vcmask (!%p216_p3), 27648   ;;  %vm311_vm6 = vcmask (!%p216_p3), 24576  }
   0x8   : > { %vm897_vm0 = vcmp.lt.s32.totalorder (!%p216_p3), %v313_v0, 256  ;;  %v901_v3 = vshrl.u32 (!%p216_p3), %v313_v0, 7  ;;  %v553_v47 = vunpack.c.l.s4 (!%p216_p3), %v851_v46  ;;  %vm602_vm7 = vcmask (!%p216_p3), 0  }
   0x9   : > { %317 = vst.msk [vmem:[#allocation2] sm:$0x3] (!%p216_p3), %vm897_vm0, %v850_v4 }
   0xa   : > { %v347_v5 = vsub.s32 (!%p216_p3), 1, %v901_v3  ;;  %v343_v6 = vsub.s32 (!%p216_p3), 0, %v901_v3  ;;  %v554_v50 = vunpack.c.0.s8 (!%p216_p3), %v553_v47 }
   0xc   : > { %v557_v55 = vsub.s32 (!%p216_p3), %v554_v50, %v901_v3 }
   0xe   : > { %s970_s15 = smov (!%p268_p4, %s839_s15), 1 }
   0xf   : > { %s776_s19 = sshll.u32 %s970_s15, 1  ;;  %s786_s20 = sshll.u32 %s970_s15, 3 }
  0x10   : > { %s284_s23 = scalar_lea.vmem %s959_s1, %s776_s19  ;;  %s275_s26 = scalar_lea.vmem %s958_s0, %s786_s20  ;;  %v546_v58 = vld [vmem:[#allocation2] sm:$0x3] }
  0x11   : > { %v319_v7 = vld [vmem:[%s284_s23] sm:$0x3]  ;;  %s777_s27 = sshll.u32 %s970_s15, 2  ;;  %s298_s30 = scalar_lea.vmem %s961_s3, %s970_s15 }
  0x12   : > { %v318_v8 = vld [vmem:[%s275_s26] sm:$0xff]  ;;  %v348_v9 = vrot.slane %v319_v7, %v347_v5  ;;  %v344_v10 = vrot.slane %v319_v7, %v343_v6  ;;  %s292_s7 = scalar_lea.vmem %s960_s2, %s777_s27  ;;  %312 = vst.msk [vmem:[%s298_s30] sm:$0x1] %vm311_vm6, %v850_v4  ;;  %s304_s10 = scalar_lea.vmem %s962_s4, %s970_s15 }
  0x13   : > { %v335_v11 = vcombine.high %v318_v8, %v318_v8  ;;  %v506_v12 = vsel %vm505_vm1, %v318_v8, -inf  ;;  %310 = vst.msk [vmem:[%s292_s7] sm:$0xf] %vm309_vm5, %v850_v4 }
  0x14   : > { %v507_v13 = vrot.slane %v506_v12, 4  ;;  %vm350_vm2 = vcmp.eq.s32.totalorder %v901_v3, %v348_v9  ;;  %vm349_vm3 = vcmp.eq.s32.totalorder %v901_v3, %v344_v10 }
  0x15   : > { %422 = vmatprep.mubr.f32.mxu0 %v335_v11  ;;  %v513_v14 = vsel %vm505_vm1, %v335_v11, -inf  ;;  %780 = vmatprep.subr.msk.mxu0 %vm350_vm2, %v849_v1 }
  0x16   : > { %782 = vmatprep.subr.msk.mxu1 %vm350_vm2, %v849_v1  ;;  %v508_v15 = vmax.f32 %v506_v12, %v507_v13  ;;  %v514_v16 = vrot.slane %v513_v14, 4  ;;  %781 = vmatpush1.xpose.msk.msra.mxu0 %vm349_vm3, %v849_v1 }
  0x17   : > { %783 = vmatpush1.xpose.msk.msra.mxu1 %vm349_vm3, %v849_v1 }
  0x18   : > { %v509_v17 = vrot.slane %v508_v15, 2  ;;  %v515_v18 = vmax.f32 %v513_v14, %v514_v16 }
  0x19   : > { %423 = vmatmul.mubr.f32.vlgmr.msra.gmra.mrb[0].mxu0 %v318_v8  ;;  %v431_v3 = vld [vmem:[%s298_s30] sm:$0x1] }
  0x1a   : > { %v510_v19 = vmax.f32 %v508_v15, %v509_v17  ;;  %v516_v20 = vrot.slane %v515_v18, 2  ;;  %497 = vmatmul.mubr.f32.vlgmr.msra.gmra.mrb[0].mxu1 %v849_v1  ;;  %v357_v2 = vld [vmem:[%s292_s7] sm:$0xf] }
  0x1c   : > { %v511_v21 = vrot.slane %v510_v19, 1  ;;  %v517_v22 = vmax.f32 %v515_v18, %v516_v20 }
  0x1e   : > { %v512_v23 = vmax.f32 %v510_v19, %v511_v21  ;;  %v518_v24 = vrot.slane %v517_v22, 1 }
  0x20   : > { %v519_v25 = vmax.f32 %v517_v22, %v518_v24  ;;  %v520_v26 = vsub.f32 %v318_v8, %v512_v23 }
  0x22   : > { %v521_v27 = vsub.f32 %v335_v11, %v519_v25  ;;  %v522_v28 = vmul.f32 1.442695, %v520_v26 }
  0x24   : > { %817 = vpow2.f32 %v522_v28  ;;  %v524_v29 = vmul.f32 1.442695, %v521_v27 }
  0x26   : > { %819 = vpow2.f32 %v524_v29 }
  0x2e   : > { %v818_v30 = vpop.eup %817 }
  0x2f   : > { %v526_v31 = vsel %vm505_vm1, %v818_v30, 0.0 }
  0x30   : > { %v820_v32 = vpop.eup %819  ;;  %v527_v33 = vrot.slane %v526_v31, 4 }
  0x31   : > { %v533_v34 = vsel %vm505_vm1, %v820_v32, 0.0 }
  0x32   : > { %v528_v35 = vadd.f32 %v527_v33, %v526_v31  ;;  %v534_v36 = vrot.slane %v533_v34, 4 }
  0x34   : > { %v529_v37 = vrot.slane %v528_v35, 2  ;;  %v535_v38 = vadd.f32 %v534_v36, %v533_v34 }
  0x36   : > { %v530_v39 = vadd.f32 %v529_v37, %v528_v35  ;;  %v536_v40 = vrot.slane %v535_v38, 2 }
  0x38   : > { %v531_v41 = vrot.slane %v530_v39, 1  ;;  %v537_v42 = vadd.f32 %v536_v40, %v535_v38 }
  0x3a   : > { %v532_v43 = vadd.f32 %v531_v41, %v530_v39  ;;  %v538_v44 = vrot.slane %v537_v42, 1 }
  0x3c   : > { %v539_v45 = vadd.f32 %v538_v44, %v537_v42  ;;  %821 = vlog2.f32 %v532_v43 }
  0x3e   : > { %823 = vlog2.f32 %v539_v45 }
  0x46   : > { %v822_v48 = vpop.eup %821 }
  0x47   : > { %v541_v49 = vmul.f32 0.6931472, %v822_v48 }
  0x48   : > { %v824_v51 = vpop.eup %823 }
  0x49   : > { %v543_v52 = vmul.f32 0.6931472, %v824_v51  ;;  %v544_v53 = vadd.f32 %v541_v49, %v512_v23 }
  0x4b   : > { %v545_v54 = vadd.f32 %v543_v52, %v519_v25 }
  0x4d   : > { %v551_v56 = vcombine.low %v544_v53, %v545_v54 }
  0x4f   : > { %v558_v57 = vrot.slane %v551_v56, %v557_v55 }
  0x51   : > { %v565_v59 = vrot.slane %v558_v57, %v557_v55 }
  0x53   : > { %v567_v60 = vadd.f32 %v565_v59, %v546_v58 }
  0x55   : > { %572 = vst.msk [vmem:[#allocation2] sm:$0x3] %vm897_vm0, %v567_v60 }
  0x5c   : > { %v576_v61 = vld [vmem:[#allocation2] sm:$0x3] }
  0x5d   : > { %v581_v62 = vrot.slane %v576_v61, %v343_v6  ;;  %v585_v63 = vrot.slane %v576_v61, %v347_v5 }
  0x5f   : > { %v589_v0 = vsel %vm588_vm4, %v581_v62, 0.0  ;;  %v590_v1 = vsel %vm588_vm4, %v585_v63, 0.0 }
  0x60   : > { %v591_v7 = vadd.f32 %v590_v1, %v589_v0 }
  0x62   : > { %592 = vadd.xlane.f32.xlu0 %v591_v7 }
  0xec   : > { %v424_v5 = vpop.f32.mrb[0].mxu0 }
  0xed   : > { %v498_v6 = vpop.f32.mrb[0].mxu1  ;;  %v428_v8 = vadd.f32 %v424_v5, %v357_v2  ;;  %v426_v10 = vpop.f32.mrb[1].mxu0 }
  0xee   : > { %v502_v9 = vadd.f32 %v498_v6, %v431_v3  ;;  %v500_v11 = vpop.f32.mrb[1].mxu1 }
  0xef   : > { %v593_v12 = vpop.xlane.xlu0 %592  ;;  %430 = vst.msk [vmem:[%s292_s7] sm:$0xf] %vm309_vm5, %v428_v8 }
  0xf0   : > { %v594_v13 = vrot.slane %v593_v12, 4  ;;  %504 = vst.msk [vmem:[%s298_s30] sm:$0x1] %vm311_vm6, %v502_v9 }
  0xf2   : > { %v595_v14 = vadd.f32 %v594_v13, %v593_v12 }
  0xf4   : > { %v596_v15 = vrot.slane %v595_v14, 2 }
  0xf6   : > { %v597_v16 = vadd.f32 %v596_v15, %v595_v14 }
  0xf8   : > { %v598_v17 = vrot.slane %v597_v16, 1 }
  0xfa   : > { %v599_v18 = vadd.f32 %v598_v17, %v597_v16 }
  0xfc   : > { %787 = vpush %v599_v18 }
 0x12d   : > { %s788_s11 = spop %787 }
 0x12e   : > { %v601_v4 = vstv %s788_s11 }
 0x12f   : > { %603 = vst.msk [vmem:[%s304_s10] sm:$0x1] %vm602_vm7, %v601_v4 }
 0x130 PF: > { %s15_s17 = sadd.s32 1, %s847_s17   ;;  %s965_s15 = smov %s843_s16 }
 0x131   : > { %p12_p5 = scmp.ge.s32.totalorder %s15_s17, 4   ;;  %s966_s16 = smov %s968_s18 }
 0x133   :  { %14 = sbr.rel (!%p12_p5) target bundleno = 2 (0x2), region = 93 }

</bundles_post_ra>
